<compile_context>
chip_gen: v6e
topology: v6e:2x2x1
jax: 0.10.0
libtpu: 0.0.40
codegen_flags: <defaults>
</compile_context>

<pallas_src>
import jax
import jax.numpy as jnp
from jax.experimental import pallas as pl
from jax.experimental.pallas import tpu as pltpu

_LANE = 128
_SUBLANE_ALIGN = 32            # covers f32 / bf16 / int8 sublane packing
_MIN_GRID_BLOCKS = 8           # target grid length so DMA in/out + compute pipeline
_MIN_BLOCK_BYTES = 64 * 1024   # don't split finer than this (per-step overhead)


def _poly_sigmoid_kernel(t_ref, o_ref):
    # 0.5 + 0.25*t - 0.125*t**3, Horner form (5 VALU ops/elem; VPU has huge slack
    # in this mem-bound kernel).  Compute in f32, cast back on store.
    t = t_ref[...].astype(jnp.float32)
    o_ref[...] = (0.5 + t * (0.25 - 0.125 * (t * t))).astype(o_ref.dtype)


def _tpu_block_budget():
    """(target_block_bytes, vmem_limit_bytes) tuned per TPU generation."""
    try:
        vmem_bytes = pltpu.get_tpu_info().vmem_capacity_bytes
    except Exception:
        vmem_bytes = 64 * 1024 * 1024  # unknown backend: be conservative (v7x-safe)
    if vmem_bytes >= 96 * 1024 * 1024:
        # v5e / v6e: 128 MiB physical VMEM -> 8 MiB blocks, 2 bufs x (in+out) = 32 MiB
        return 8 * 1024 * 1024, 64 * 1024 * 1024
    # v7x: 64 MiB VMEM per TensorCore -> cap at 4 MiB blocks (16 MiB buffered)
    return 4 * 1024 * 1024, 32 * 1024 * 1024


def _round_down(x: int, align: int) -> int:
    return max(align, (x // align) * align)


def poly_sigmoid(x: jax.Array, *, min_pallas_bytes: int = 256 * 1024) -> jax.Array:
    """Apply 0.5 + 0.25*x - 0.125*x**3 elementwise via a Pallas TPU kernel."""
    n = x.size
    if n == 0:
        return x

    itemsize = jnp.dtype(x.dtype).itemsize
    if n * itemsize < min_pallas_bytes:
        # Tiny activations: kernel dispatch overhead dominates; let XLA fuse the
        # 5-op polynomial (same math, same dtype).
        return (0.5 + 0.25 * x - 0.125 * x ** 3).astype(x.dtype)

    block_bytes, vmem_limit = _tpu_block_budget()
    # TODO(synk): verify on v7x whether plain "parallel" core-shards the 1-D grid
    # or whether CORE_PARALLEL is required (neutral on single-TC v5e/v6e).
    compiler_params = pltpu.CompilerParams(
        dimension_semantics=("parallel",),
        vmem_limit_bytes=vmem_limit,
    )

    # ---- choose a lane-dense 2-D slab layout (no pad, no post-slice) ----------
    widths = (2048, 1024, 512, 256, _LANE)
    width = None
    # Pass A: widest width that fills vreg sublanes AND leaves enough rows to
    # split into pipelined blocks.
    for w in widths:
        if n % w == 0 and (n // w) % 8 == 0 and (n // w) >= _MIN_GRID_BLOCKS * _SUBLANE_ALIGN:
            width = w
            break
    if width is None:
        # Pass B: widest width that fills vreg sublanes (rows % 8 == 0).
        for w in widths:
            if n % w == 0 and (n // w) % 8 == 0:
                width = w
                break
    if width is None:
        # Pass C: widest divisor.
        for w in widths:
            if n % w == 0:
                width = w
                break

    flat = x.reshape(-1)

    if width is not None:
        rows = n // width
        row_bytes = width * itemsize

        if rows < 2 * _SUBLANE_ALIGN:
            block_rows = rows                        # single full-extent block
        else:
            cap_rows = _round_down(block_bytes // row_bytes, _SUBLANE_ALIGN)
            split_rows = _round_down(rows // _MIN_GRID_BLOCKS, _SUBLANE_ALIGN)
            floor_rows = _round_down(_MIN_BLOCK_BYTES // row_bytes, _SUBLANE_ALIGN)
            block_rows = min(rows, cap_rows, max(split_rows, floor_rows))
        grid = (pl.cdiv(rows, block_rows),)

        slab = flat.reshape(rows, width)
        out = pl.pallas_call(
            _poly_sigmoid_kernel,
            out_shape=jax.ShapeDtypeStruct((rows, width), x.dtype),
            grid_spec=pltpu.PrefetchScalarGridSpec(
                num_scalar_prefetch=0,
                grid=grid,
                in_specs=[pl.BlockSpec((block_rows, width), lambda i: (i, 0))],
                out_specs=pl.BlockSpec((block_rows, width), lambda i: (i, 0)),
            ),
            compiler_params=compiler_params,
        )(slab)
        return out.reshape(x.shape)

    # ---- ragged element count: flat 1-D kernel, partial last block masked -----
    chunk = 8 * _LANE  # 1024-element granularity (lane multiple)
    cap_elems = _round_down(block_bytes // itemsize, chunk)
    split_elems = _round_down(n // _MIN_GRID_BLOCKS, chunk)
    floor_elems = _round_down(_MIN_BLOCK_BYTES // itemsize, chunk)
    block_elems = min(cap_elems, max(split_elems, floor_elems))
    if block_elems >= n:
        block_elems = n                              # single full-extent block
    grid = (pl.cdiv(n, block_elems),)

    out = pl.pallas_call(
        _poly_sigmoid_kernel,
        out_shape=jax.ShapeDtypeStruct((n,), x.dtype),
        grid_spec=pltpu.PrefetchScalarGridSpec(
            num_scalar_prefetch=0,
            grid=grid,
            in_specs=[pl.BlockSpec((block_elems,), lambda i: (i,))],
            out_specs=pl.BlockSpec((block_elems,), lambda i: (i,)),
        ),
        compiler_params=compiler_params,
    )(flat)
    return out.reshape(x.shape)


def _ref(x):
    return 0.5 + 0.25 * x - 0.125 * x ** 3


if __name__ == "__main__":
    key = jax.random.PRNGKey(0)
    k1, k2, k3 = jax.random.split(key, 3)

    # 1) Small NCHW activation consistent with a 5-layer CNN: default path
    #    (tiny -> fused jnp expression, no kernel dispatch).
    x1 = jax.random.normal(k1, (2, 4, 16, 16), dtype=jnp.float32)
    y1 = jax.block_until_ready(poly_sigmoid(x1))
    assert y1.shape == x1.shape and y1.dtype == x1.dtype
    assert jnp.allclose(y1, _ref(x1), atol=1e-5, rtol=1e-5)

    # 2) Same input forced through the Pallas kernel (sublane-filled (8, 256) slab).
    y1k = jax.block_until_ready(poly_sigmoid(x1, min_pallas_bytes=0))
    assert y1k.shape == x1.shape and y1k.dtype == x1.dtype
    assert jnp.allclose(y1k, _ref(x1), atol=1e-5, rtol=1e-5)

    # 3) Medium aligned activation: exercises the multi-block pipelined grid.
    x2 = jax.random.normal(k2, (4, 8, 32, 64), dtype=jnp.float32)
    y2 = jax.block_until_ready(poly_sigmoid(x2))
    assert y2.shape == x2.shape and y2.dtype == x2.dtype
    assert jnp.allclose(y2, _ref(x2), atol=1e-5, rtol=1e-5)

    # 4) Ragged element count: exercises the pad-free flat 1-D kernel path.
    x3 = jax.random.normal(k3, (3, 5, 7), dtype=jnp.float32)
    y3 = jax.block_until_ready(poly_sigmoid(x3, min_pallas_bytes=0))
    assert y3.shape == x3.shape and y3.dtype == x3.dtype
    assert jnp.allclose(y3, _ref(x3), atol=1e-5, rtol=1e-5)

    print("KERNEL_OK")
</pallas_src>

<mosaic_0001>
module attributes {stable_mosaic.version = 11 : i64} {
  func.func @_poly_sigmoid_kernel(%arg0: i32, %arg1: memref<8x256xf32, #tpu.memory_space<vmem>>, %arg2: memref<8x256xf32, #tpu.memory_space<vmem>>) attributes {dimension_semantics = [#tpu.dimension_semantics<parallel>], iteration_bounds = array<i64: 1>, scalar_prefetch = 0 : i64, scratch_operands = 0 : i64, tpu.core_type = #tpu.core_type<tc>, window_params = [{transform_indices = @transform_0, window_bounds = array<i64: 8, 256>}, {transform_indices = @transform_1, window_bounds = array<i64: 8, 256>}]} {
    %c0 = arith.constant 0 : index
    %c0_0 = arith.constant 0 : index
    %0 = vector.load %arg1[%c0, %c0_0] : memref<8x256xf32, #tpu.memory_space<vmem>>, vector<8x256xf32>
    %1 = arith.mulf %0, %0 : vector<8x256xf32>
    %cst = arith.constant 1.250000e-01 : f32
    %2 = vector.broadcast %cst : f32 to vector<8x256xf32>
    %3 = arith.mulf %2, %1 : vector<8x256xf32>
    %cst_1 = arith.constant 2.500000e-01 : f32
    %4 = vector.broadcast %cst_1 : f32 to vector<8x256xf32>
    %5 = arith.subf %4, %3 : vector<8x256xf32>
    %6 = arith.mulf %0, %5 : vector<8x256xf32>
    %cst_2 = arith.constant 5.000000e-01 : f32
    %7 = vector.broadcast %cst_2 : f32 to vector<8x256xf32>
    %8 = arith.addf %7, %6 : vector<8x256xf32>
    %c0_3 = arith.constant 0 : index
    %c0_4 = arith.constant 0 : index
    %9 = vector.load %arg2[%c0_3, %c0_4] : memref<8x256xf32, #tpu.memory_space<vmem>>, vector<8x256xf32>
    tpu.vector_store %arg2[%c0_3, %c0_4], %8 {strides = array<i32>} : memref<8x256xf32, #tpu.memory_space<vmem>>, vector<8x256xf32>,
    return
  }
  func.func @transform_0(%arg0: i32) -> (i32, i32) {
    %c0_i32 = arith.constant 0 : i32
    %c0_i32_0 = arith.constant 0 : i32
    return %arg0, %c0_i32 : i32, i32
  }
  func.func @transform_1(%arg0: i32) -> (i32, i32) {
    %c0_i32 = arith.constant 0 : i32
    %c0_i32_0 = arith.constant 0 : i32
    return %arg0, %c0_i32 : i32, i32
  }
}

</mosaic_0001>

<bundles_post_ra>
// kernel: tpu_custom_call.1
= control target key start
LH: loop header
LB: loop body
LE: loop exit
PB: predicated region body
PF: predicated region fallthrough
CT: control target
= control target key end

     0   :  { %6 = vsyncpa [#allocation3], 0  ;;  %s114_s0 = inlined_call_operand.hbm [shape: f32[8,256], index: 0, kind: input, shape index: {}]   ;;  %s115_s1 = inlined_call_operand.hbm [shape: f32[8,256], index: 1, kind: output, shape index: {}]  }
   0x1   :  { %7 = vsyncpa [#allocation4], 0  ;;  %s96_s6 = smov [#allocation2]  }
   0x2   :  { %s14_s7 = sshll.u32 %s96_s6, 4  ;;  %s15_s7 = int_to_ptr.vmem [resolvable:$true] %s14_s7 }
   0x3   :  { %s60_s8 = scalar_lea.vmem %s15_s7, 256  ;;  %p65_p1 = scmp.lt.s32.totalorder %s15_s7, %s15_s7 }
   0x4   :  { %p61_p0 = scmp.ne.s32.totalorder %s15_s7, %s60_s8  ;;  %p66_p2 = scmp.lt.s32.totalorder %s60_s8, %s60_s8 }
   0x6   :  { %p67_p3 = por %p66_p2, %p65_p1 }
   0x8   :  { %p68_p4 = pnand %p67_p3, %p61_p0 }
   0xa   :  { %71 = shalt.err (!%p68_p4)
}
   0xb   :  { %17 = dma.hbm_to_vmem [thread:$0]  %s114_s0, 256, %s15_s7, [#allocation3]  }
   0xc   :  { %92 = dma.done.wait [#allocation3], 256  }
   0xd   :  { %93 = vsyncadd [#allocation3], 4294967040  ;;  %v21_v0 = vld [vmem:[#allocation2] sm:$0xff]  ;;  %v22_v1 = vld [vmem:[#allocation2 + $0x8] sm:$0xff]  ;;  %s97_s11 = smov [#allocation5]  }
   0xe   :  { %v23_v2 = vmul.f32 %v21_v0, %v21_v0  ;;  %v24_v3 = vmul.f32 %v22_v1, %v22_v1  ;;  %s41_s12 = sshll.u32 %s97_s11, 4  ;;  %s42_s12 = int_to_ptr.vmem [resolvable:$true] %s41_s12 }
   0xf   :  { %s72_s0 = scalar_lea.vmem %s42_s12, 256  ;;  %p77_p6 = scmp.lt.s32.totalorder %s42_s12, %s42_s12 }
  0x10   :  { %v25_v4 = vmul.f32 0.125, %v23_v2  ;;  %v26_v5 = vmul.f32 0.125, %v24_v3  ;;  %p73_p5 = scmp.ne.s32.totalorder %s42_s12, %s72_s0  ;;  %p78_p7 = scmp.lt.s32.totalorder %s72_s0, %s72_s0 }
  0x12   :  { %v27_v6 = vsub.f32 0.25, %v25_v4  ;;  %v28_v7 = vsub.f32 0.25, %v26_v5  ;;  %p79_p8 = por %p78_p7, %p77_p6 }
  0x14   :  { %v29_v8 = vmul.f32 %v27_v6, %v21_v0  ;;  %v30_v9 = vmul.f32 %v28_v7, %v22_v1  ;;  %p80_p9 = pnand %p79_p8, %p73_p5 }
  0x16   :  { %v31_v10 = vadd.f32 0.5, %v29_v8  ;;  %v32_v11 = vadd.f32 0.5, %v30_v9 }
  0x18   :  { %33 = vst [vmem:[#allocation5] sm:$0xff] %v31_v10  ;;  %34 = vst [vmem:[#allocation5 + $0x8] sm:$0xff] %v32_v11 }
  0x19   :  { %83 = shalt.err (!%p80_p9)
}
  0x1a   :  { %44 = dma.vmem_to_hbm [thread:$0]  %s42_s12, 256, %s115_s1, [#allocation4]  }
  0x1b   :  { %94 = dma.done.wait [#allocation4], 256  }
  0x1c   :  { %95 = vsyncadd [#allocation4], 4294967040 }
  0x1d   :  { %48 = vsyncpa [#allocation3], 1 }
  0x1e   :  { %49 = vsyncpa [#allocation4], 1 }

</bundles_post_ra>
